<compile_context>
chip_gen: v5e
topology: v5e:2x2
jax: 0.10.0
libtpu: 0.0.40
codegen_flags: <defaults>
</compile_context>

<pallas_src>
import math
from functools import partial

import jax
import jax.numpy as jnp
from jax.experimental import pallas as pl
from jax.experimental.pallas import tpu as pltpu


OUT_PAD = 128                    # lane-dense packed output width (>= action_dim + 1)
DEFAULT_TILE_B = 1024            # large batch tiles amortize per-grid-step overhead
VMEM_LIMIT_BYTES = 40 * 1024 * 1024  # > 16/32 MiB defaults, < v7x 64 MiB physical


def _round_up(n, m):
    return -(-n // m) * m


def _actor_critic_kernel(x_ref, w1_ref, b1_ref, w2_ref, b2_ref, out_ref,
                         *, action_dim):
    # In-kernel bf16 cast (VPU op hidden under DMA/MXU slack) -- the wrapper
    # streams raw f32 so there is no separate XLA cast pass over x in HBM.
    x = x_ref[...].astype(jnp.bfloat16)

    # Fused first layer: [hc | ha] = relu(x @ [w1c | w1a] + [b1c | b1a])
    h = jnp.dot(x, w1_ref[...], preferred_element_type=jnp.float32)
    # Materialize the inter-matmul temp in bf16: halves ld/st traffic for the
    # [tb, 2H] buffer that spills out of vregs at large batch tiles.
    h = jnp.maximum(h + b1_ref[...], 0.0).astype(jnp.bfloat16)

    # Fused (block-diagonal) second layer on the MXU:
    #   lanes [0, A)  -> actor logits (from ha rows of w2)
    #   lane  A       -> critic value (from hc rows of w2)
    #   lanes (A,128) -> zero columns (padding)
    slab = jnp.dot(h, w2_ref[...],
                   preferred_element_type=jnp.float32) + b2_ref[...]   # [tb, 128] f32

    lane = jax.lax.broadcasted_iota(jnp.int32, slab.shape, 1)
    # Mask non-actor lanes with a huge negative so softmax ignores them exactly.
    logits = jnp.where(lane < action_dim, slab, -1e30)
    m = jnp.max(logits, axis=1, keepdims=True)
    e = jnp.exp(logits - m)                                # padded lanes -> exactly 0
    probs = e * pl.reciprocal(jnp.sum(e, axis=1, keepdims=True), approx=True)

    # Lane-dense packed slab: probs in lanes [0, A), value in lane A, 0 elsewhere.
    # Stored as bf16 -> halves the dominant HBM writeback stream.
    packed = probs + jnp.where(lane == action_dim, slab, 0.0)
    out_ref[...] = packed.astype(out_ref.dtype)


def actor_critic_forward(x, fused, *, action_dim, tile_b=DEFAULT_TILE_B):
    """Fused actor-critic forward.

    x:     [B, state_dim] float32
    fused: dict from fuse_params() (bf16 weights, f32 biases).
    Returns (probs [B, action_dim] f32, value [B, 1] f32).
    """
    B, S = x.shape
    H2 = fused["w1"].shape[1]          # 2 * hidden_dim
    out_pad = fused["w2"].shape[1]     # OUT_PAD

    b8 = _round_up(B, 8)
    tb = min(tile_b, b8)
    # v7x megacore: once the batch is big enough that a half tile still
    # amortizes per-step overhead, force >=2 grid tiles so the "parallel"
    # batch axis actually shards across both TensorCores.
    if tb == b8 and b8 >= 1024:
        tb = _round_up(_round_up(b8, 2) // 2, 8)
    Bp = _round_up(b8, tb)
    xp = x if Bp == B else jnp.pad(x, ((0, Bp - B), (0, 0)))   # stays f32

    out = pl.pallas_call(
        partial(_actor_critic_kernel, action_dim=action_dim),
        out_shape=jax.ShapeDtypeStruct((Bp, out_pad), jnp.bfloat16),
        grid_spec=pltpu.PrefetchScalarGridSpec(
            num_scalar_prefetch=0,
            grid=(Bp // tb,),
            in_specs=[
                pl.BlockSpec((tb, S), lambda i: (i, 0)),        # x tile (f32)
                pl.BlockSpec((S, H2), lambda i: (0, 0)),        # fused w1 (resident)
                pl.BlockSpec((1, H2), lambda i: (0, 0)),        # fused b1
                pl.BlockSpec((H2, out_pad), lambda i: (0, 0)),  # fused head w2
                pl.BlockSpec((1, out_pad), lambda i: (0, 0)),   # fused head b2
            ],
            out_specs=pl.BlockSpec((tb, out_pad), lambda i: (i, 0)),
        ),
        compiler_params=pltpu.CompilerParams(
            dimension_semantics=("parallel",),
            vmem_limit_bytes=VMEM_LIMIT_BYTES),
    )(xp, fused["w1"], fused["b1"], fused["w2"], fused["b2"])

    # Single post-kernel slice of the big [Bp, 128] slab; the split + f32
    # upcast then only touch the tiny [B, A+1] result.
    head = out[:B, :action_dim + 1].astype(jnp.float32)
    probs = head[:, :action_dim]
    value = head[:, action_dim:action_dim + 1]
    return probs, value


def _init_linear(key, in_dim, out_dim):
    """PyTorch nn.Linear default init, stored transposed as [in, out]."""
    bound = 1.0 / math.sqrt(in_dim)
    kw, kb = jax.random.split(key)
    w = jax.random.uniform(kw, (in_dim, out_dim), jnp.float32, -bound, bound)
    b = jax.random.uniform(kb, (1, out_dim), jnp.float32, -bound, bound)
    return w, b


def init_actor_critic(key, state_dim, action_dim, hidden_dim=256):
    k1, k2, k3, k4 = jax.random.split(key, 4)
    w1c, b1c = _init_linear(k1, state_dim, hidden_dim)
    w2c, b2c = _init_linear(k2, hidden_dim, 1)
    w1a, b1a = _init_linear(k3, state_dim, hidden_dim)
    w2a, b2a = _init_linear(k4, hidden_dim, action_dim)
    return dict(w1c=w1c, b1c=b1c, w2c=w2c, b2c=b2c,
                w1a=w1a, b1a=b1a, w2a=w2a, b2a=b2a)


def fuse_params(params, action_dim, out_pad=OUT_PAD):
    """Builds the fused / padded bf16 parameter layout (do this once)."""
    w1c, b1c = params["w1c"], params["b1c"]   # [S,H], [1,H]
    w2c, b2c = params["w2c"], params["b2c"]   # [H,1], [1,1]
    w1a, b1a = params["w1a"], params["b1a"]   # [S,H], [1,H]
    w2a, b2a = params["w2a"], params["b2a"]   # [H,A], [1,A]
    S, H = w1c.shape
    A = action_dim
    assert A + 1 <= out_pad

    # Fused first layer: critic hidden in lanes [0,H), actor hidden in [H,2H).
    w1 = jnp.concatenate([w1c, w1a], axis=1).astype(jnp.bfloat16)      # [S, 2H]
    b1 = jnp.concatenate([b1c, b1a], axis=1).astype(jnp.float32)       # [1, 2H]

    # Block-diagonal head: critic rows feed lane A, actor rows feed lanes [0,A).
    w2 = jnp.zeros((2 * H, out_pad), jnp.float32)
    w2 = w2.at[:H, A].set(w2c[:, 0])
    w2 = w2.at[H:, :A].set(w2a)
    w2 = w2.astype(jnp.bfloat16)                                       # [2H, 128]

    b2 = jnp.zeros((1, out_pad), jnp.float32)
    b2 = b2.at[:, :A].set(b2a)
    b2 = b2.at[:, A].set(b2c[:, 0])                                    # [1, 128]
    return dict(w1=w1, b1=b1, w2=w2, b2=b2)


def reference_forward(x, params):
    """Pure-JAX f32 reference matching the PyTorch module."""
    hc = jnp.maximum(x @ params["w1c"] + params["b1c"], 0.0)
    value = hc @ params["w2c"] + params["b2c"]
    ha = jnp.maximum(x @ params["w1a"] + params["b1a"], 0.0)
    logits = ha @ params["w2a"] + params["b2a"]
    probs = jax.nn.softmax(logits, axis=1)
    return probs, value


if __name__ == "__main__":
    key = jax.random.PRNGKey(0)
    k_params, k_x = jax.random.split(key)

    B, state_dim, action_dim, hidden_dim = 8, 16, 4, 256
    params = init_actor_critic(k_params, state_dim, action_dim, hidden_dim)
    fused = fuse_params(params, action_dim)
    x = jax.random.normal(k_x, (B, state_dim), jnp.float32)

    probs, value = actor_critic_forward(x, fused, action_dim=action_dim)
    probs = jax.block_until_ready(probs)
    value = jax.block_until_ready(value)

    assert probs.shape == (B, action_dim)
    assert value.shape == (B, 1)
    assert bool(jnp.all(probs >= 0.0))
    # Rows sum to ~1 (approx reciprocal on EUP + bf16 output slab).
    assert bool(jnp.allclose(jnp.sum(probs, axis=1), 1.0, atol=2e-2))

    # Parity with the f32 reference within bf16 matmul/output tolerance.
    ref_probs, ref_value = reference_forward(x, params)
    assert bool(jnp.allclose(probs, ref_probs, atol=5e-2))
    assert bool(jnp.allclose(value, ref_value, atol=5e-2))

    print("KERNEL_OK")
</pallas_src>

<mosaic_0001>
module attributes {stable_mosaic.version = 11 : i64} {
  func.func @_actor_critic_kernel(%arg0: i32, %arg1: memref<8x16xf32, #tpu.memory_space<vmem>>, %arg2: memref<16x512xbf16, #tpu.memory_space<vmem>>, %arg3: memref<1x512xf32, #tpu.memory_space<vmem>>, %arg4: memref<512x128xbf16, #tpu.memory_space<vmem>>, %arg5: memref<1x128xf32, #tpu.memory_space<vmem>>, %arg6: memref<8x128xbf16, #tpu.memory_space<vmem>>) attributes {dimension_semantics = [#tpu.dimension_semantics<parallel>], iteration_bounds = array<i64: 1>, scalar_prefetch = 0 : i64, scratch_operands = 0 : i64, tpu.core_type = #tpu.core_type<tc>, window_params = [{transform_indices = @transform_0, window_bounds = array<i64: 8, 16>}, {pipeline_mode = #tpu.pipeline_mode<synchronous>, transform_indices = @transform_1, window_bounds = array<i64: 16, 512>}, {pipeline_mode = #tpu.pipeline_mode<synchronous>, transform_indices = @transform_2, window_bounds = array<i64: 1, 512>}, {pipeline_mode = #tpu.pipeline_mode<synchronous>, transform_indices = @transform_3, window_bounds = array<i64: 512, 128>}, {pipeline_mode = #tpu.pipeline_mode<synchronous>, transform_indices = @transform_4, window_bounds = array<i64: 1, 128>}, {transform_indices = @transform_5, window_bounds = array<i64: 8, 128>}]} {
    %c0 = arith.constant 0 : index
    %c0_0 = arith.constant 0 : index
    %0 = vector.load %arg1[%c0, %c0_0] : memref<8x16xf32, #tpu.memory_space<vmem>>, vector<8x16xf32>
    %1 = arith.truncf %0 : vector<8x16xf32> to vector<8x16xbf16>
    %c0_1 = arith.constant 0 : index
    %c0_2 = arith.constant 0 : index
    %2 = vector.load %arg2[%c0_1, %c0_2] : memref<16x512xbf16, #tpu.memory_space<vmem>>, vector<16x512xbf16>
    %cst = arith.constant dense<0.000000e+00> : vector<8x512xf32>
    %3 = tpu.matmul %1, %2, %cst {dimension_numbers = #tpu.dot_dimension_numbers<[1], [0], [0], [1], [0, 0, 1, 1], [], []>} : vector<8x16xbf16>, vector<16x512xbf16>, vector<8x512xf32> -> vector<8x512xf32>
    %c0_3 = arith.constant 0 : index
    %c0_4 = arith.constant 0 : index
    %4 = vector.load %arg3[%c0_3, %c0_4] : memref<1x512xf32, #tpu.memory_space<vmem>>, vector<1x512xf32>
    %5 = vector.broadcast %4 : vector<1x512xf32> to vector<8x512xf32>
    %6 = arith.addf %3, %5 : vector<8x512xf32>
    %cst_5 = arith.constant 0.000000e+00 : f32
    %7 = vector.broadcast %cst_5 : f32 to vector<8x512xf32>
    %8 = arith.maximumf %6, %7 : vector<8x512xf32>
    %9 = arith.truncf %8 : vector<8x512xf32> to vector<8x512xbf16>
    %c0_6 = arith.constant 0 : index
    %c0_7 = arith.constant 0 : index
    %10 = vector.load %arg4[%c0_6, %c0_7] : memref<512x128xbf16, #tpu.memory_space<vmem>>, vector<512x128xbf16>
    %cst_8 = arith.constant dense<0.000000e+00> : vector<8x128xf32>
    %11 = tpu.matmul %9, %10, %cst_8 {dimension_numbers = #tpu.dot_dimension_numbers<[1], [0], [0], [1], [0, 0, 1, 1], [], []>} : vector<8x512xbf16>, vector<512x128xbf16>, vector<8x128xf32> -> vector<8x128xf32>
    %c0_9 = arith.constant 0 : index
    %c0_10 = arith.constant 0 : index
    %12 = vector.load %arg5[%c0_9, %c0_10] : memref<1x128xf32, #tpu.memory_space<vmem>>, vector<1x128xf32>
    %13 = vector.broadcast %12 : vector<1x128xf32> to vector<8x128xf32>
    %14 = arith.addf %11, %13 : vector<8x128xf32>
    %15 = tpu.iota {dimensions = array<i32: 1>} : vector<8x128xi32>
    %c4_i32 = arith.constant 4 : i32
    %16 = vector.broadcast %c4_i32 : i32 to vector<8x128xi32>
    %17 = arith.cmpi slt, %15, %16 : vector<8x128xi32>
    %cst_11 = arith.constant -1.000000e+30 : f32
    %18 = vector.broadcast %cst_11 : f32 to vector<8x128xf32>
    %19 = arith.select %17, %14, %18 : vector<8x128xi1>, vector<8x128xf32>
    %cst_12 = arith.constant dense<0xFF800000> : vector<8xf32>
    %20 = vector.multi_reduction <maximumf>, %19, %cst_12 [1] : vector<8x128xf32> to vector<8xf32>
    %21 = vector.shape_cast %20 : vector<8xf32> to vector<8x1xf32>
    %22 = vector.broadcast %21 : vector<8x1xf32> to vector<8x128xf32>
    %23 = arith.subf %19, %22 : vector<8x128xf32>
    %24 = math.exp %23 : vector<8x128xf32>
    %cst_13 = arith.constant dense<0.000000e+00> : vector<8xf32>
    %25 = vector.multi_reduction <add>, %24, %cst_13 [1] : vector<8x128xf32> to vector<8xf32>
    %26 = vector.shape_cast %25 : vector<8xf32> to vector<8x1xf32>
    %27 = tpu.reciprocal %26 {approx = true} : vector<8x1xf32> -> vector<8x1xf32>
    %28 = vector.broadcast %27 : vector<8x1xf32> to vector<8x128xf32>
    %29 = arith.mulf %24, %28 : vector<8x128xf32>
    %c4_i32_14 = arith.constant 4 : i32
    %30 = vector.broadcast %c4_i32_14 : i32 to vector<8x128xi32>
    %31 = arith.cmpi eq, %15, %30 : vector<8x128xi32>
    %cst_15 = arith.constant 0.000000e+00 : f32
    %32 = vector.broadcast %cst_15 : f32 to vector<8x128xf32>
    %33 = arith.select %31, %14, %32 : vector<8x128xi1>, vector<8x128xf32>
    %34 = arith.addf %29, %33 : vector<8x128xf32>
    %35 = arith.truncf %34 : vector<8x128xf32> to vector<8x128xbf16>
    %c0_16 = arith.constant 0 : index
    %c0_17 = arith.constant 0 : index
    %36 = vector.load %arg6[%c0_16, %c0_17] : memref<8x128xbf16, #tpu.memory_space<vmem>>, vector<8x128xbf16>
    tpu.vector_store %arg6[%c0_16, %c0_17], %35 {strides = array<i32>} : memref<8x128xbf16, #tpu.memory_space<vmem>>, vector<8x128xbf16>,
    return
  }
  func.func @transform_0(%arg0: i32) -> (i32, i32) {
    %c0_i32 = arith.constant 0 : i32
    %c0_i32_0 = arith.constant 0 : i32
    return %arg0, %c0_i32 : i32, i32
  }
  func.func @transform_1(%arg0: i32) -> (i32, i32) {
    %c0_i32 = arith.constant 0 : i32
    %c0_i32_0 = arith.constant 0 : i32
    %c0_i32_1 = arith.constant 0 : i32
    return %c0_i32, %c0_i32_0 : i32, i32
  }
  func.func @transform_2(%arg0: i32) -> (i32, i32) {
    %c0_i32 = arith.constant 0 : i32
    %c0_i32_0 = arith.constant 0 : i32
    %c0_i32_1 = arith.constant 0 : i32
    return %c0_i32, %c0_i32_0 : i32, i32
  }
  func.func @transform_3(%arg0: i32) -> (i32, i32) {
    %c0_i32 = arith.constant 0 : i32
    %c0_i32_0 = arith.constant 0 : i32
    %c0_i32_1 = arith.constant 0 : i32
    return %c0_i32, %c0_i32_0 : i32, i32
  }
  func.func @transform_4(%arg0: i32) -> (i32, i32) {
    %c0_i32 = arith.constant 0 : i32
    %c0_i32_0 = arith.constant 0 : i32
    %c0_i32_1 = arith.constant 0 : i32
    return %c0_i32, %c0_i32_0 : i32, i32
  }
  func.func @transform_5(%arg0: i32) -> (i32, i32) {
    %c0_i32 = arith.constant 0 : i32
    %c0_i32_0 = arith.constant 0 : i32
    return %arg0, %c0_i32 : i32, i32
  }
}

</mosaic_0001>

<bundles_post_ra>
// kernel: tpu_custom_call.1
= control target key start
LH: loop header
LB: loop body
LE: loop exit
PB: predicated region body
PF: predicated region fallthrough
CT: control target
= control target key end

     0   :  { %10 = vsyncpa [#allocation3], 0  ;;  %s913_s0 = inlined_call_operand.hbm [shape: f32[8,16], index: 0, kind: input, shape index: {}]   ;;  %s914_s1 = inlined_call_operand.hbm [shape: bf16[16,512], index: 1, kind: input, shape index: {}]   ;;  %s915_s2 = inlined_call_operand.hbm [shape: f32[1,512], index: 2, kind: input, shape index: {}]   ;;  %s916_s3 = inlined_call_operand.hbm [shape: bf16[512,128], index: 3, kind: input, shape index: {}]   ;;  %s917_s4 = inlined_call_operand.vmem [shape: f32[1,128], index: 4, kind: input, shape index: {}]   ;;  %s918_s5 = inlined_call_operand.hbm [shape: bf16[8,128], index: 5, kind: output, shape index: {}]  }
   0x1   :  { %11 = vsyncpa [#allocation6], 0 }
   0x2   :  { %12 = vsyncpa [#allocation9], 0  ;;  %s29_s20 = sshll.u32 %s914_s1, 4  ;;  %s30_s20 = int_to_ptr.hbm [resolvable:$true] %s29_s20 }
   0x3   :  { %13 = vsyncpa [#allocation4], 0  ;;  %s856_s21 = smov [#allocation5]   ;;  %s19_s25 = sshll.u32 %s913_s0, 4  ;;  %s20_s25 = int_to_ptr.hbm [resolvable:$true] %s19_s25 }
   0x4   :  { %s31_s22 = sshll.u32 %s856_s21, 4  ;;  %s857_s26 = smov 256   ;;  %s32_s22 = int_to_ptr.vmem [resolvable:$true] %s31_s22 }
   0x5   :  { %s858_s27 = smov 16   ;;  %s859_s28 = smov [#allocation2]  }
   0x6   :  { %37 = dma.hbm_to_vmem [thread:$0]  %s30_s20, 512, %s32_s22, [#allocation6], %s857_s26, %s857_s26, %s858_s27  }
   0x7   :  { %s21_s29 = sshll.u32 %s859_s28, 4  ;;  %s43_s7 = sshll.u32 %s915_s2, 4  ;;  %s22_s29 = int_to_ptr.vmem [resolvable:$true] %s21_s29  ;;  %s44_s7 = int_to_ptr.hbm [resolvable:$true] %s43_s7 }
   0x8   :  { %24 = dma.hbm_to_vmem [thread:$0]  %s20_s25, 128, %s22_s29, [#allocation3]  }
   0x9   :  { %s53_s9 = sshll.u32 %s916_s3, 4  ;;  %s860_s10 = smov [#allocation7]   ;;  %s54_s9 = int_to_ptr.hbm [resolvable:$true] %s53_s9 }
   0xa   :  { %s45_s11 = sshll.u32 %s860_s10, 4  ;;  %s861_s0 = smov [#allocation8]   ;;  %s46_s11 = int_to_ptr.vmem [resolvable:$true] %s45_s11 }
   0xb   :  { %48 = dma.hbm_to_vmem [thread:$0]  %s44_s7, 64, %s46_s11, [#allocation6]  }
   0xc   :  { %s55_s12 = sshll.u32 %s861_s0, 4  ;;  %s862_s13 = smov 64   ;;  %s56_s12 = int_to_ptr.vmem [resolvable:$true] %s55_s12 }
   0xd   :  { %s863_s14 = smov 4  }
   0xe   :  { %61 = dma.hbm_to_vmem [thread:$0]  %s54_s9, 4096, %s56_s12, [#allocation9], %s862_s13, %s862_s13, %s863_s14  }
   0xf   :  { %848 = dma.done.wait [#allocation3], 128  }
  0x10   :  { %849 = vsyncadd [#allocation3], 4294967168 }
  0x11   :  { %850 = dma.done.wait [#allocation6], 576  }
  0x12   :  { %851 = vsyncadd [#allocation6], 4294966720 }
  0x13   :  { %852 = dma.done.wait [#allocation9], 4096  }
  0x14   :  { %853 = vsyncadd [#allocation9], 4294963200  ;;  %v532_v0 = vld [vmem:[#allocation5] sm:$0xf]  ;;  %v680_v1 = vld [vmem:[#allocation5 + $0xc] sm:$0xf0] }
  0x15   :  { %v540_v2 = vld [vmem:[#allocation5 + $0x8] sm:$0xf]  ;;  %v533_v3 = vor.u32 %v680_v1, %v532_v0  ;;  %v681_v4 = vld [vmem:[#allocation5 + $0x14] sm:$0xf0]  ;;  %v679_v5 = vld [vmem:[#allocation5 + $0xc] sm:$0xf] }
  0x16   :  { %v542_v6 = vld [vmem:[#allocation5 + $0x18] sm:$0xf0]  ;;  %v541_v7 = vor.u32 %v681_v4, %v540_v2  ;;  %v678_v9 = vld [vmem:[#allocation5 + $0x4] sm:$0xf]  ;;  %v534_v10 = vld [vmem:[#allocation5 + $0x10] sm:$0xf0] }
  0x17   :  { %v545_v8 = vor.u32 %v679_v5, %v542_v6  ;;  %v81_v11 = vld [vmem:[#allocation2] sm:$0xff]  ;;  %128 = vmatpush.bf16.msra.mxu0 %v533_v3  ;;  %v537_v12 = vor.u32 %v678_v9, %v534_v10  ;;  %vm117_vm0 = vcmask 130048   ;;  %v687_v21 = vld [vmem:[#allocation8 + $0x28] sm:$0xff]  ;;  %v686_v25 = vld [vmem:[#allocation8 + $0x20] sm:$0xff]  ;;  %s518_s18 = sshll.u32 %s918_s5, 4  ;;  %s519_s18 = int_to_ptr.hbm [resolvable:$true] %s518_s18 }
  0x18   :  { %v82_v13 = vpack.c.bf16 %v81_v11, %v81_v11  ;;  %v689_v14 = vld [vmem:[#allocation8 + $0x38] sm:$0xff]  ;;  %154 = vmatpush.bf16.msra.mxu2 %v541_v7  ;;  %v688_v17 = vld [vmem:[#allocation8 + $0x30] sm:$0xff]  ;;  %v695_v23 = vld [vmem:[#allocation8 + $0x68] sm:$0xff]  ;;  %v493_v11 = vlaneseq }
  0x19   :  { %v697_v15 = vld [vmem:[#allocation8 + $0x78] sm:$0xff]  ;;  %167 = vmatpush.bf16.msra.mxu3 %v545_v8  ;;  %141 = vmatpush.bf16.msra.mxu1 %v537_v12  ;;  %v696_v19 = vld [vmem:[#allocation8 + $0x70] sm:$0xff]  ;;  %v703_v24 = vld [vmem:[#allocation8 + $0xa8] sm:$0xff] }
  0x1a   :  { %v705_v16 = vld [vmem:[#allocation8 + $0xb8] sm:$0xff]  ;;  %546 = vmatmul.msk.bf16.vlgmr.msra.gmra.mxu0 %vm117_vm0, %v82_v13  ;;  %v704_v20 = vld [vmem:[#allocation8 + $0xb0] sm:$0xff]  ;;  %v711_v26 = vld [vmem:[#allocation8 + $0xe8] sm:$0xff] }
  0x1b   :  { %441 = vmatpush.bf16.msrb.mxu0 %v689_v14  ;;  %v713_v18 = vld [vmem:[#allocation8 + $0xf8] sm:$0xff]  ;;  %548 = vmatmul.msk.bf16.vlgmr.msra.gmra.mxu2 %vm117_vm0, %v82_v13  ;;  %v712_v22 = vld [vmem:[#allocation8 + $0xf0] sm:$0xff]  ;;  %v694_v27 = vld [vmem:[#allocation8 + $0x60] sm:$0xff] }
  0x1c   :  { %549 = vmatmul.msk.bf16.vlgmr.msra.gmra.mxu3 %vm117_vm0, %v82_v13  ;;  %547 = vmatmul.msk.bf16.vlgmr.msra.gmra.mxu1 %vm117_vm0, %v82_v13  ;;  %v702_v28 = vld [vmem:[#allocation8 + $0xa0] sm:$0xff]  ;;  %v685_v29 = vld [vmem:[#allocation8 + $0x18] sm:$0xff]  ;;  %v684_v33 = vld [vmem:[#allocation8 + $0x10] sm:$0xff] }
  0x1d   :  { %454 = vmatpush.bf16.msrb.mxu1 %v697_v15  ;;  %467 = vmatpush.bf16.msrb.mxu2 %v705_v16  ;;  %v710_v30 = vld [vmem:[#allocation8 + $0xe0] sm:$0xff]  ;;  %v693_v31 = vld [vmem:[#allocation8 + $0x58] sm:$0xff]  ;;  %v692_v35 = vld [vmem:[#allocation8 + $0x50] sm:$0xff]  ;;  %v494_v15 = vand.u32 127, %v493_v11 }
  0x1e   :  { %480 = vmatpush.bf16.msrb.mxu3 %v713_v18  ;;  %v701_v32 = vld [vmem:[#allocation8 + $0x98] sm:$0xff]  ;;  %v683_v36 = vld [vmem:[#allocation8 + $0x8] sm:$0xff]  ;;  %v700_v38 = vld [vmem:[#allocation8 + $0x90] sm:$0xff] }
  0x1f   :  { %442 = vmatpush.bf16.msrb.mxu0 %v688_v17  ;;  %v709_v34 = vld [vmem:[#allocation8 + $0xd8] sm:$0xff]  ;;  %v691_v37 = vld [vmem:[#allocation8 + $0x48] sm:$0xff]  ;;  %v708_v39 = vld [vmem:[#allocation8 + $0xd0] sm:$0xff]  ;;  %vm506_vm1 = vcmp.eq.s32.totalorder %v494_v15, 4  ;;  %vm495_vm2 = vcmp.lt.s32.totalorder %v494_v15, 4 }
  0x20   :  { %v682_v40 = vld [vmem:[#allocation8] sm:$0xff]  ;;  %v699_v42 = vld [vmem:[#allocation8 + $0x88] sm:$0xff]  ;;  %v87_v46 = vld [vmem:[#allocation7] sm:$0xf] }
  0x21   :  { %455 = vmatpush.bf16.msrb.mxu1 %v696_v19  ;;  %468 = vmatpush.bf16.msrb.mxu2 %v704_v20  ;;  %v690_v41 = vld [vmem:[#allocation8 + $0x40] sm:$0xff]  ;;  %v707_v43 = vld [vmem:[#allocation8 + $0xc8] sm:$0xff]  ;;  %v89_v47 = vperm.slane %v87_v46, 0  ;;  %v90_v48 = vperm.slane %v87_v46, 1  ;;  %v91_v54 = vperm.slane %v87_v46, 2  ;;  %v92_v55 = vperm.slane %v87_v46, 3 }
  0x22   :  { %481 = vmatpush.bf16.msrb.mxu3 %v712_v22  ;;  %v698_v44 = vld [vmem:[#allocation8 + $0x80] sm:$0xff]  ;;  %v723_v8 = vld [vmem:[%s917_s4] ss:$0 sm:$0xff]  ;;  %s864_s4 = smov [#allocation10]  }
  0x23   :  { %443 = vmatpush.bf16.msrb.mxu0 %v687_v21  ;;  %v706_v45 = vld [vmem:[#allocation8 + $0xc0] sm:$0xff]  ;;  %s516_s15 = sshll.u32 %s864_s4, 4  ;;  %s517_s15 = int_to_ptr.vmem [resolvable:$true] %s516_s15 }
  0x25   :  { %456 = vmatpush.bf16.msrb.mxu1 %v695_v23  ;;  %469 = vmatpush.bf16.msrb.mxu2 %v703_v24 }
  0x26   :  { %482 = vmatpush.bf16.msrb.mxu3 %v711_v26 }
  0x27   :  { %444 = vmatpush.bf16.msrb.mxu0 %v686_v25 }
  0x29   :  { %457 = vmatpush.bf16.msrb.mxu1 %v694_v27  ;;  %470 = vmatpush.bf16.msrb.mxu2 %v702_v28 }
  0x2a   :  { %483 = vmatpush.bf16.msrb.mxu3 %v710_v30 }
  0x2b   :  { %445 = vmatpush.bf16.msrb.mxu0 %v685_v29 }
  0x2d   :  { %458 = vmatpush.bf16.msrb.mxu1 %v693_v31  ;;  %471 = vmatpush.bf16.msrb.mxu2 %v701_v32 }
  0x2e   :  { %484 = vmatpush.bf16.msrb.mxu3 %v709_v34 }
  0x2f   :  { %446 = vmatpush.bf16.msrb.mxu0 %v684_v33 }
  0x31   :  { %459 = vmatpush.bf16.msrb.mxu1 %v692_v35  ;;  %472 = vmatpush.bf16.msrb.mxu2 %v700_v38 }
  0x32   :  { %485 = vmatpush.bf16.msrb.mxu3 %v708_v39 }
  0x33   :  { %447 = vmatpush.bf16.msrb.mxu0 %v683_v36 }
  0x35   :  { %460 = vmatpush.bf16.msrb.mxu1 %v691_v37  ;;  %473 = vmatpush.bf16.msrb.mxu2 %v699_v42 }
  0x36   :  { %486 = vmatpush.bf16.msrb.mxu3 %v707_v43 }
  0x37   :  { %448 = vmatpush.bf16.msrb.mxu0 %v682_v40 }
  0x39   :  { %461 = vmatpush.bf16.msrb.mxu1 %v690_v41  ;;  %474 = vmatpush.bf16.msrb.mxu2 %v698_v44 }
  0x3a   :  { %487 = vmatpush.bf16.msrb.mxu3 %v706_v45 }
  0x97   :  { %v130_v49 = vpop.f32.mrf.mxu0 }
  0x98   :  { %v131_v50 = vadd.f32 %v130_v49, %v89_v47 }
  0x99   :  { %v143_v51 = vpop.f32.mrf.mxu1 }
  0x9a   :  { %v173_v52 = vmax.f32 %v131_v50, 0.0  ;;  %v144_v53 = vadd.f32 %v143_v51, %v90_v48 }
  0x9c   :  { %v177_v56 = vpack.c.bf16 %v173_v52, %v173_v52  ;;  %v174_v57 = vmax.f32 %v144_v53, 0.0 }
  0x9e   :  { %v178_v58 = vpack.c.bf16 %v174_v57, %v174_v57  ;;  %v156_v59 = vpop.f32.mrf.mxu2  ;;  %449 = vmatmul.bf16.vlgmr.msrb.gmra.mxu0 %v177_v56 }
  0x9f   :  { %v169_v60 = vpop.f32.mrf.mxu3  ;;  %v157_v61 = vadd.f32 %v156_v59, %v91_v54  ;;  %v132_v63 = vpop.f32.mrf.mxu0 }
  0xa0   :  { %v170_v62 = vadd.f32 %v169_v60, %v92_v55  ;;  %462 = vmatmul.bf16.vlgmr.msrb.gmra.mxu1 %v178_v58 }
  0xa1   :  { %v175_v0 = vmax.f32 %v157_v61, 0.0  ;;  %v145_v2 = vpop.f32.mrf.mxu1 }
  0xa2   :  { %v176_v1 = vmax.f32 %v170_v62, 0.0 }
  0xa3   :  { %v179_v3 = vpack.c.bf16 %v175_v0, %v175_v0 }
  0xa4   :  { %v180_v4 = vpack.c.bf16 %v176_v1, %v176_v1 }
  0xa5   :  { %475 = vmatmul.bf16.vlgmr.msrb.gmra.mxu2 %v179_v3 }
  0xa6   :  { %488 = vmatmul.bf16.vlgmr.msrb.gmra.mxu3 %v180_v4  ;;  %v158_v5 = vpop.f32.mrf.mxu2 }
  0xa7   :  { %v171_v6 = vpop.f32.mrf.mxu3 }
 0x11b   :  { %v450_v7 = vpop.f32.mrf.mxu0 }
 0x11c   :  { %v451_v10 = vadd.f32 %v723_v8, %v450_v7 }
 0x11d   :  { %v463_v9 = vpop.f32.mrf.mxu1 }
 0x11e   :  { %v464_v13 = vadd.f32 %v463_v9, %v451_v10 }
 0x123   :  { %v452_v12 = vpop.f32.mrf.mxu0 }
 0x125   :  { %v465_v14 = vpop.f32.mrf.mxu1 }
 0x128   :  { %v476_v16 = vpop.f32.mrf.mxu2 }
 0x129   :  { %v489_v17 = vpop.f32.mrf.mxu3  ;;  %v477_v18 = vadd.f32 %v476_v16, %v464_v13 }
 0x12b   :  { %v490_v19 = vadd.f32 %v489_v17, %v477_v18 }
 0x12d   :  { %v507_v20 = vsel %vm506_vm1, %v490_v19, 0.0  ;;  %v496_v21 = vsel %vm495_vm2, %v490_v19, -1e+30 }
 0x12e   :  { %497 = vmax.xlane.f32.xlu0 %v496_v21 }
 0x130   :  { %v478_v22 = vpop.f32.mrf.mxu2 }
 0x131   :  { %v491_v23 = vpop.f32.mrf.mxu3 }
 0x1a1   :  { %v498_v24 = vpop.xlane.xlu0 %497 }
 0x1a2   :  { %v499_v25 = vsub.f32 %v496_v21, %v498_v24 }
 0x1a4   :  { %v500_v26 = vmul.f32 1.442695, %v499_v25 }
 0x1a6   :  { %724 = vpow2.f32 %v500_v26 }
 0x1ac   :  { %v725_v27 = vpop.eup %724 }
 0x1ad   :  { %502 = vadd.xlane.f32.xlu0 %v725_v27 }
 0x220   :  { %v503_v28 = vpop.xlane.xlu0 %502 }
 0x221   :  { %726 = vrcp.f32 %v503_v28 }
 0x227   :  { %v727_v29 = vpop.eup %726 }
 0x228   :  { %v505_v30 = vmul.f32 %v727_v29, %v725_v27 }
 0x22a   :  { %v508_v31 = vadd.f32 %v507_v20, %v505_v30 }
 0x22c   :  { %v509_v32 = vpack.c.bf16 %v508_v31, %v508_v31 }
 0x22e   :  { %510 = vst [vmem:[#allocation10] sm:$0xf] %v509_v32 }
 0x22f   :  { %521 = dma.vmem_to_hbm [thread:$0]  %s517_s15, 64, %s519_s18, [#allocation4]  }
 0x230   :  { %854 = dma.done.wait [#allocation4], 64  }
 0x231   :  { %855 = vsyncadd [#allocation4], 4294967232 }
 0x232   :  { %526 = vsyncpa [#allocation3], 1 }
 0x233   :  { %527 = vsyncpa [#allocation6], 1 }
 0x234   :  { %528 = vsyncpa [#allocation9], 1 }
 0x235   :  { %529 = vsyncpa [#allocation4], 1 }

</bundles_post_ra>
